<compile_context>
chip_gen: v7x
topology: tpu7x:2x2x1
jax: 0.10.0
libtpu: 0.0.40
codegen_flags: <defaults>
</compile_context>

<pallas_src>
import jax
import jax.numpy as jnp
from jax.experimental import pallas as pl
from jax.experimental.pallas import tpu as pltpu


# --------------------------------------------------------------------------- #
# Kernel
# --------------------------------------------------------------------------- #
def _mlp_kernel(x_ref, w1_ref, b1_ref, w2_ref, b2_ref, o_ref):
    # First matmul on the MXU: bf16 x bf16 -> f32 accumulate.
    # x: [TB, D], w1t: [D, Hp]  (pre-transposed in the wrapper, plain M,K x K,N)
    h = jnp.dot(x_ref[...], w1_ref[...], preferred_element_type=jnp.float32)
    # f32 epilogue (bias + LeakyReLU(0.1)); v5e's VPU has no bf16 ALU.
    h = h + b1_ref[...]
    h = jnp.where(h > 0, h, 0.1 * h)
    # Second matmul: cast only the MXU inputs back to bf16, accumulate in f32.
    # h: [TB, Hp], w2t: [Hp, Cp]
    out = jnp.dot(h.astype(w2_ref.dtype), w2_ref[...],
                  preferred_element_type=jnp.float32)
    out = out + b2_ref[...]
    o_ref[...] = out.astype(o_ref.dtype)


# --------------------------------------------------------------------------- #
# One-time parameter preparation (hoisted OFF the per-call forward path)
# --------------------------------------------------------------------------- #
def _round_up(n, m):
    return ((n + m - 1) // m) * m


def prepare_mlp_params(w1, b1, w2, b2, compute_dtype=jnp.bfloat16):
    """Pad H/C to lane (128) multiples, pre-transpose to [D,Hp] / [Hp,Cp] and
    cast the matmul inputs to bf16 once.  Biases stay f32 (f32 epilogue).

    PyTorch Linear layout on input: w1 [h_dim, image_size], w2 [cls_num, h_dim].
    """
    H, D = w1.shape
    C = w2.shape[0]
    Hp = _round_up(H, 128)
    Cp = _round_up(C, 128)

    w1t = jnp.zeros((D, Hp), compute_dtype).at[:, :H].set(w1.T.astype(compute_dtype))
    w2t = jnp.zeros((Hp, Cp), compute_dtype).at[:H, :C].set(w2.T.astype(compute_dtype))
    b1p = jnp.zeros((1, Hp), jnp.float32).at[0, :H].set(b1.astype(jnp.float32))
    b2p = jnp.zeros((1, Cp), jnp.float32).at[0, :C].set(b2.astype(jnp.float32))
    return {"w1t": w1t, "b1": b1p, "w2t": w2t, "b2": b2p, "d": D, "h": H, "c": C}


# --------------------------------------------------------------------------- #
# Forward wrapper
# --------------------------------------------------------------------------- #
def _pick_batch_tile(b_rows, max_batch_tile):
    """Tile rows are a multiple of 16 (bf16 sublane tile); aim for >=2 grid
    steps when the batch allows it so v7x's two TensorCores both get work."""
    tb = min(max_batch_tile, b_rows)
    if 32 <= b_rows <= max_batch_tile:
        tb = _round_up(pl.cdiv(b_rows, 2), 16)
    return max(16, _round_up(tb, 16))


def _build_call(B_rows, D, Hp, Cp, TB, grid, out_dtype, vmem_limit,
                single_buffer_weights):
    if single_buffer_weights:
        # Resident blocks never change index -> one pipeline buffer is enough.
        def resident(shape):
            return pl.BlockSpec(shape, lambda i: (0, 0),
                                pipeline_mode=pl.Buffered(1))
    else:
        def resident(shape):
            return pl.BlockSpec(shape, lambda i: (0, 0))

    return pl.pallas_call(
        _mlp_kernel,
        out_shape=jax.ShapeDtypeStruct((B_rows, Cp), out_dtype),
        grid=grid,
        in_specs=[
            pl.BlockSpec((TB, D), lambda i: (i, 0)),   # x: streamed over batch
            resident((D, Hp)),                          # w1t (VMEM-resident)
            resident((1, Hp)),                          # b1
            resident((Hp, Cp)),                         # w2t
            resident((1, Cp)),                          # b2
        ],
        out_specs=pl.BlockSpec((TB, Cp), lambda i: (i, 0)),
        compiler_params=pltpu.CompilerParams(
            dimension_semantics=("parallel",),          # shard batch across TCs
            vmem_limit_bytes=vmem_limit,
        ),
    )


def mlp_forward(x, params, *, max_batch_tile=512):
    """x: [B, C, H, W] (NCHW, like PyTorch).  params: output of prepare_mlp_params."""
    B = x.shape[0]
    x2d = x.reshape(B, -1)                                  # flatten (glue)
    D = x2d.shape[1]
    assert D == params["d"], "image_size mismatch with prepared params"

    w1t, b1p, w2t, b2p = params["w1t"], params["b1"], params["w2t"], params["b2"]
    Hp, Cp, C = w1t.shape[1], w2t.shape[1], params["c"]
    compute_dtype = w1t.dtype
    out_dtype = x.dtype

    # bf16 activation at the call boundary (halves x HBM traffic, bf16 MXU).
    xk = x2d.astype(compute_dtype)
    # Row-pad only if the batch isn't sublane-aligned (no feature-dim pad copy).
    B_rows = _round_up(B, 16)
    if B_rows != B:
        xk = jnp.zeros((B_rows, D), compute_dtype).at[:B].set(xk)

    TB = _pick_batch_tile(B_rows, max_batch_tile)
    grid = (pl.cdiv(B_rows, TB),)

    # Explicit VMEM budget (v7x has 64 MiB physical; default scoped is 32 MiB).
    cbytes = jnp.dtype(compute_dtype).itemsize
    obytes = jnp.dtype(out_dtype).itemsize
    est = (2 * TB * D * cbytes                 # x, double-buffered
           + 2 * TB * Cp * obytes              # out, double-buffered
           + 2 * (D * Hp + Hp * Cp) * cbytes   # weights (worst case: 2 buffers)
           + 2 * (Hp + Cp) * 4                 # biases
           + TB * Hp * 4)                      # f32 intermediate h
    vmem_limit = int(min(64 * 2**20, max(32 * 2**20, 2 * est)))

    try:
        out_p = _build_call(B_rows, D, Hp, Cp, TB, grid, out_dtype, vmem_limit,
                            single_buffer_weights=True)(xk, w1t, b1p, w2t, b2p)
    except Exception:
        # Fallback for JAX builds that reject pipeline_mode=pl.Buffered(1);
        # only costs extra VMEM for the resident weights.
        out_p = _build_call(B_rows, D, Hp, Cp, TB, grid, out_dtype, vmem_limit,
                            single_buffer_weights=False)(xk, w1t, b1p, w2t, b2p)

    return out_p[:B, :C]


# --------------------------------------------------------------------------- #
# Reference + demo
# --------------------------------------------------------------------------- #
def _reference(x, w1, b1, w2, b2):
    x2d = x.reshape(x.shape[0], -1)
    h = x2d @ w1.T + b1
    h = jnp.where(h > 0, h, 0.1 * h)
    return h @ w2.T + b2


if __name__ == "__main__":
    # Small shapes consistent with the module: 8x8 single-channel "images",
    # image_size = 64, h_dim = 32, cls_num = 10, batch = 2.
    B, Cin, Himg, Wimg = 2, 1, 8, 8
    image_size = Cin * Himg * Wimg      # 64
    h_dim = 32
    cls_num = 10

    key = jax.random.PRNGKey(0)
    kx, kw1, kb1, kw2, kb2 = jax.random.split(key, 5)

    x = jax.random.normal(kx, (B, Cin, Himg, Wimg), dtype=jnp.float32)

    # Deterministic param init (mirrors nn.Linear's uniform(-1/sqrt(fan_in), ...)).
    lim1 = 1.0 / (image_size ** 0.5)
    lim2 = 1.0 / (h_dim ** 0.5)
    w1 = jax.random.uniform(kw1, (h_dim, image_size), jnp.float32, -lim1, lim1)
    b1 = jax.random.uniform(kb1, (h_dim,), jnp.float32, -lim1, lim1)
    w2 = jax.random.uniform(kw2, (cls_num, h_dim), jnp.float32, -lim2, lim2)
    b2 = jax.random.uniform(kb2, (cls_num,), jnp.float32, -lim2, lim2)

    # One-time parameter prep (pad / pre-transpose / bf16 cast) — off the
    # per-call forward path.
    params = prepare_mlp_params(w1, b1, w2, b2)

    out = mlp_forward(x, params)
    out = jax.block_until_ready(out)

    ref = _reference(x, w1, b1, w2, b2)
    assert out.shape == (B, cls_num)
    # bf16 MXU inputs (f32 accumulation / f32 epilogue): tolerance reflects
    # bf16 input quantization; typical error at these shapes is ~1e-3.
    assert jnp.allclose(out, ref.astype(out.dtype), atol=5e-2, rtol=5e-2), \
        "mismatch vs reference"

    print("KERNEL_OK")
</pallas_src>

<mosaic_0001>
module attributes {stable_mosaic.version = 11 : i64} {
  func.func @_mlp_kernel(%arg0: i32, %arg1: memref<16x64xbf16, #tpu.memory_space<vmem>>, %arg2: memref<64x128xbf16, #tpu.memory_space<vmem>>, %arg3: memref<1x128xf32, #tpu.memory_space<vmem>>, %arg4: memref<128x128xbf16, #tpu.memory_space<vmem>>, %arg5: memref<1x128xf32, #tpu.memory_space<vmem>>, %arg6: memref<16x128xf32, #tpu.memory_space<vmem>>) attributes {dimension_semantics = [#tpu.dimension_semantics<parallel>], iteration_bounds = array<i64: 1>, scalar_prefetch = 0 : i64, scratch_operands = 0 : i64, tpu.core_type = #tpu.core_type<tc>, window_params = [{transform_indices = @transform_0, window_bounds = array<i64: 16, 64>}, {pipeline_mode = #tpu.pipeline_mode<synchronous>, transform_indices = @transform_1, window_bounds = array<i64: 64, 128>}, {pipeline_mode = #tpu.pipeline_mode<synchronous>, transform_indices = @transform_2, window_bounds = array<i64: 1, 128>}, {pipeline_mode = #tpu.pipeline_mode<synchronous>, transform_indices = @transform_3, window_bounds = array<i64: 128, 128>}, {pipeline_mode = #tpu.pipeline_mode<synchronous>, transform_indices = @transform_4, window_bounds = array<i64: 1, 128>}, {transform_indices = @transform_5, window_bounds = array<i64: 16, 128>}]} {
    %c0 = arith.constant 0 : index
    %c0_0 = arith.constant 0 : index
    %0 = vector.load %arg1[%c0, %c0_0] : memref<16x64xbf16, #tpu.memory_space<vmem>>, vector<16x64xbf16>
    %c0_1 = arith.constant 0 : index
    %c0_2 = arith.constant 0 : index
    %1 = vector.load %arg2[%c0_1, %c0_2] : memref<64x128xbf16, #tpu.memory_space<vmem>>, vector<64x128xbf16>
    %cst = arith.constant dense<0.000000e+00> : vector<16x128xf32>
    %2 = tpu.matmul %0, %1, %cst {dimension_numbers = #tpu.dot_dimension_numbers<[1], [0], [0], [1], [0, 0, 1, 1], [], []>} : vector<16x64xbf16>, vector<64x128xbf16>, vector<16x128xf32> -> vector<16x128xf32>
    %c0_3 = arith.constant 0 : index
    %c0_4 = arith.constant 0 : index
    %3 = vector.load %arg3[%c0_3, %c0_4] : memref<1x128xf32, #tpu.memory_space<vmem>>, vector<1x128xf32>
    %4 = vector.broadcast %3 : vector<1x128xf32> to vector<16x128xf32>
    %5 = arith.addf %2, %4 : vector<16x128xf32>
    %cst_5 = arith.constant 0.000000e+00 : f32
    %6 = vector.broadcast %cst_5 : f32 to vector<16x128xf32>
    %7 = arith.cmpf ogt, %5, %6 : vector<16x128xf32>
    %cst_6 = arith.constant 1.000000e-01 : f32
    %8 = vector.broadcast %cst_6 : f32 to vector<16x128xf32>
    %9 = arith.mulf %8, %5 : vector<16x128xf32>
    %10 = arith.select %7, %5, %9 : vector<16x128xi1>, vector<16x128xf32>
    %11 = arith.truncf %10 : vector<16x128xf32> to vector<16x128xbf16>
    %c0_7 = arith.constant 0 : index
    %c0_8 = arith.constant 0 : index
    %12 = vector.load %arg4[%c0_7, %c0_8] : memref<128x128xbf16, #tpu.memory_space<vmem>>, vector<128x128xbf16>
    %cst_9 = arith.constant dense<0.000000e+00> : vector<16x128xf32>
    %13 = tpu.matmul %11, %12, %cst_9 {dimension_numbers = #tpu.dot_dimension_numbers<[1], [0], [0], [1], [0, 0, 1, 1], [], []>} : vector<16x128xbf16>, vector<128x128xbf16>, vector<16x128xf32> -> vector<16x128xf32>
    %c0_10 = arith.constant 0 : index
    %c0_11 = arith.constant 0 : index
    %14 = vector.load %arg5[%c0_10, %c0_11] : memref<1x128xf32, #tpu.memory_space<vmem>>, vector<1x128xf32>
    %15 = vector.broadcast %14 : vector<1x128xf32> to vector<16x128xf32>
    %16 = arith.addf %13, %15 : vector<16x128xf32>
    %c0_12 = arith.constant 0 : index
    %c0_13 = arith.constant 0 : index
    %17 = vector.load %arg6[%c0_12, %c0_13] : memref<16x128xf32, #tpu.memory_space<vmem>>, vector<16x128xf32>
    tpu.vector_store %arg6[%c0_12, %c0_13], %16 {strides = array<i32>} : memref<16x128xf32, #tpu.memory_space<vmem>>, vector<16x128xf32>,
    return
  }
  func.func @transform_0(%arg0: i32) -> (i32, i32) {
    %c0_i32 = arith.constant 0 : i32
    %c0_i32_0 = arith.constant 0 : i32
    return %arg0, %c0_i32 : i32, i32
  }
  func.func @transform_1(%arg0: i32) -> (i32, i32) {
    %c0_i32 = arith.constant 0 : i32
    %c0_i32_0 = arith.constant 0 : i32
    %c0_i32_1 = arith.constant 0 : i32
    return %c0_i32, %c0_i32_0 : i32, i32
  }
  func.func @transform_2(%arg0: i32) -> (i32, i32) {
    %c0_i32 = arith.constant 0 : i32
    %c0_i32_0 = arith.constant 0 : i32
    %c0_i32_1 = arith.constant 0 : i32
    return %c0_i32, %c0_i32_0 : i32, i32
  }
  func.func @transform_3(%arg0: i32) -> (i32, i32) {
    %c0_i32 = arith.constant 0 : i32
    %c0_i32_0 = arith.constant 0 : i32
    %c0_i32_1 = arith.constant 0 : i32
    return %c0_i32, %c0_i32_0 : i32, i32
  }
  func.func @transform_4(%arg0: i32) -> (i32, i32) {
    %c0_i32 = arith.constant 0 : i32
    %c0_i32_0 = arith.constant 0 : i32
    %c0_i32_1 = arith.constant 0 : i32
    return %c0_i32, %c0_i32_0 : i32, i32
  }
  func.func @transform_5(%arg0: i32) -> (i32, i32) {
    %c0_i32 = arith.constant 0 : i32
    %c0_i32_0 = arith.constant 0 : i32
    return %arg0, %c0_i32 : i32, i32
  }
}

module attributes {stable_mosaic.version = 11 : i64} {
  func.func @_mlp_kernel(%arg0: i32, %arg1: memref<16x64xbf16, #tpu.memory_space<vmem>>, %arg2: memref<64x128xbf16, #tpu.memory_space<vmem>>, %arg3: memref<1x128xf32, #tpu.memory_space<vmem>>, %arg4: memref<128x128xbf16, #tpu.memory_space<vmem>>, %arg5: memref<1x128xf32, #tpu.memory_space<vmem>>, %arg6: memref<16x128xf32, #tpu.memory_space<vmem>>) attributes {dimension_semantics = [#tpu.dimension_semantics<parallel>], iteration_bounds = array<i64: 1>, scalar_prefetch = 0 : i64, scratch_operands = 0 : i64, tpu.core_type = #tpu.core_type<tc>, window_params = [{transform_indices = @transform_0, window_bounds = array<i64: 16, 64>}, {pipeline_mode = #tpu.pipeline_mode<synchronous>, transform_indices = @transform_1, window_bounds = array<i64: 64, 128>}, {pipeline_mode = #tpu.pipeline_mode<synchronous>, transform_indices = @transform_2, window_bounds = array<i64: 1, 128>}, {pipeline_mode = #tpu.pipeline_mode<synchronous>, transform_indices = @transform_3, window_bounds = array<i64: 128, 128>}, {pipeline_mode = #tpu.pipeline_mode<synchronous>, transform_indices = @transform_4, window_bounds = array<i64: 1, 128>}, {transform_indices = @transform_5, window_bounds = array<i64: 16, 128>}]} {
    %c0 = arith.constant 0 : index
    %c0_0 = arith.constant 0 : index
    %0 = vector.load %arg1[%c0, %c0_0] : memref<16x64xbf16, #tpu.memory_space<vmem>>, vector<16x64xbf16>
    %c0_1 = arith.constant 0 : index
    %c0_2 = arith.constant 0 : index
    %1 = vector.load %arg2[%c0_1, %c0_2] : memref<64x128xbf16, #tpu.memory_space<vmem>>, vector<64x128xbf16>
    %cst = arith.constant dense<0.000000e+00> : vector<16x128xf32>
    %2 = tpu.matmul %0, %1, %cst {dimension_numbers = #tpu.dot_dimension_numbers<[1], [0], [0], [1], [0, 0, 1, 1], [], []>} : vector<16x64xbf16>, vector<64x128xbf16>, vector<16x128xf32> -> vector<16x128xf32>
    %c0_3 = arith.constant 0 : index
    %c0_4 = arith.constant 0 : index
    %3 = vector.load %arg3[%c0_3, %c0_4] : memref<1x128xf32, #tpu.memory_space<vmem>>, vector<1x128xf32>
    %4 = vector.broadcast %3 : vector<1x128xf32> to vector<16x128xf32>
    %5 = arith.addf %2, %4 : vector<16x128xf32>
    %cst_5 = arith.constant 0.000000e+00 : f32
    %6 = vector.broadcast %cst_5 : f32 to vector<16x128xf32>
    %7 = arith.cmpf ogt, %5, %6 : vector<16x128xf32>
    %cst_6 = arith.constant 1.000000e-01 : f32
    %8 = vector.broadcast %cst_6 : f32 to vector<16x128xf32>
    %9 = arith.mulf %8, %5 : vector<16x128xf32>
    %10 = arith.select %7, %5, %9 : vector<16x128xi1>, vector<16x128xf32>
    %11 = arith.truncf %10 : vector<16x128xf32> to vector<16x128xbf16>
    %c0_7 = arith.constant 0 : index
    %c0_8 = arith.constant 0 : index
    %12 = vector.load %arg4[%c0_7, %c0_8] : memref<128x128xbf16, #tpu.memory_space<vmem>>, vector<128x128xbf16>
    %cst_9 = arith.constant dense<0.000000e+00> : vector<16x128xf32>
    %13 = tpu.matmul %11, %12, %cst_9 {dimension_numbers = #tpu.dot_dimension_numbers<[1], [0], [0], [1], [0, 0, 1, 1], [], []>} : vector<16x128xbf16>, vector<128x128xbf16>, vector<16x128xf32> -> vector<16x128xf32>
    %c0_10 = arith.constant 0 : index
    %c0_11 = arith.constant 0 : index
    %14 = vector.load %arg5[%c0_10, %c0_11] : memref<1x128xf32, #tpu.memory_space<vmem>>, vector<1x128xf32>
    %15 = vector.broadcast %14 : vector<1x128xf32> to vector<16x128xf32>
    %16 = arith.addf %13, %15 : vector<16x128xf32>
    %c0_12 = arith.constant 0 : index
    %c0_13 = arith.constant 0 : index
    %17 = vector.load %arg6[%c0_12, %c0_13] : memref<16x128xf32, #tpu.memory_space<vmem>>, vector<16x128xf32>
    tpu.vector_store %arg6[%c0_12, %c0_13], %16 {strides = array<i32>} : memref<16x128xf32, #tpu.memory_space<vmem>>, vector<16x128xf32>,
    return
  }
  func.func @transform_0(%arg0: i32) -> (i32, i32) {
    %c0_i32 = arith.constant 0 : i32
    %c0_i32_0 = arith.constant 0 : i32
    return %arg0, %c0_i32 : i32, i32
  }
  func.func @transform_1(%arg0: i32) -> (i32, i32) {
    %c0_i32 = arith.constant 0 : i32
    %c0_i32_0 = arith.constant 0 : i32
    %c0_i32_1 = arith.constant 0 : i32
    return %c0_i32, %c0_i32_0 : i32, i32
  }
  func.func @transform_2(%arg0: i32) -> (i32, i32) {
    %c0_i32 = arith.constant 0 : i32
    %c0_i32_0 = arith.constant 0 : i32
    %c0_i32_1 = arith.constant 0 : i32
    return %c0_i32, %c0_i32_0 : i32, i32
  }
  func.func @transform_3(%arg0: i32) -> (i32, i32) {
    %c0_i32 = arith.constant 0 : i32
    %c0_i32_0 = arith.constant 0 : i32
    %c0_i32_1 = arith.constant 0 : i32
    return %c0_i32, %c0_i32_0 : i32, i32
  }
  func.func @transform_4(%arg0: i32) -> (i32, i32) {
    %c0_i32 = arith.constant 0 : i32
    %c0_i32_0 = arith.constant 0 : i32
    %c0_i32_1 = arith.constant 0 : i32
    return %c0_i32, %c0_i32_0 : i32, i32
  }
  func.func @transform_5(%arg0: i32) -> (i32, i32) {
    %c0_i32 = arith.constant 0 : i32
    %c0_i32_0 = arith.constant 0 : i32
    return %arg0, %c0_i32 : i32, i32
  }
}

</mosaic_0001>

<bundles_post_ra>
// kernel: tpu_custom_call.1
= control target key start
LH: loop header
LB: loop body
LE: loop exit
PB: predicated region body
PF: predicated region fallthrough
CT: control target
= control target key end

     0   :  { %10 = vsyncpa [#allocation3], 0  ;;  %s582_s0 = inlined_call_operand.hbm [shape: bf16[16,64], index: 0, kind: input, shape index: {}]   ;;  %s583_s1 = inlined_call_operand.hbm [shape: bf16[64,128], index: 1, kind: input, shape index: {}]   ;;  %s584_s2 = inlined_call_operand.vmem [shape: f32[1,128], index: 2, kind: input, shape index: {}]   ;;  %s585_s3 = inlined_call_operand.hbm [shape: bf16[128,128], index: 3, kind: input, shape index: {}]   ;;  %s586_s4 = inlined_call_operand.vmem [shape: f32[1,128], index: 4, kind: input, shape index: {}]   ;;  %s587_s5 = inlined_call_operand.hbm [shape: f32[16,128], index: 5, kind: output, shape index: {}]  }
   0x1   :  { %11 = vsyncpa [#allocation6], 0 }
   0x2   :  { %12 = vsyncpa [#allocation4], 0  ;;  %s472_s18 = smov [#allocation5]   ;;  %s473_s20 = smov [#allocation2]  }
   0x3   :  { %s30_s19 = sshll.u32 %s472_s18, 4  ;;  %s18_s21 = sshll.u32 %s473_s20, 4  ;;  %s31_s19 = int_to_ptr.vmem [resolvable:$true] %s30_s19  ;;  %s512_s21 = int_to_ptr.vmem [resolvable:$true] %s18_s21 }
   0x4   :  { %s378_s24 = scalar_lea.hbm %s583_s1, 512 }
   0x5   :  { %p379_p0 = scmp.ne.s32.totalorder %s583_s1, %s378_s24  ;;  %p382_p1 = scmp.lt.u32.totalorder %s378_s24, %s583_s1 }
   0x7   :  { %p384_p2 = pnand %p382_p1, %p379_p0 }
   0x9   :  { %387 = shalt.err (!%p384_p2)
}
   0xa   :  { %s388_s29 = scalar_lea.vmem %s31_s19, 512  ;;  %p393_p4 = scmp.lt.s32.totalorder %s31_s19, %s31_s19 }
   0xb   :  { %p389_p3 = scmp.ne.s32.totalorder %s31_s19, %s388_s29  ;;  %p394_p5 = scmp.lt.s32.totalorder %s388_s29, %s388_s29 }
   0xd   :  { %p395_p6 = por %p394_p5, %p393_p4 }
   0xf   :  { %p396_p7 = pnand %p395_p6, %p389_p3 }
  0x11   :  { %399 = shalt.err (!%p396_p7)
}
  0x12   :  { %s474_s30 = smov 64   ;;  %s475_s6 = smov 4  }
  0x13   :  { %36 = dma.hbm_to_vmem [thread:$0]  %s583_s1, 512, %s31_s19, [#allocation6], %s474_s30, %s474_s30, %s475_s6  }
  0x14   :  { %s400_s11 = scalar_lea.hbm %s582_s0, 128 }
  0x15   :  { %p401_p8 = scmp.ne.s32.totalorder %s582_s0, %s400_s11  ;;  %p404_p9 = scmp.lt.u32.totalorder %s400_s11, %s582_s0 }
  0x17   :  { %p406_p10 = pnand %p404_p9, %p401_p8 }
  0x19   :  { %409 = shalt.err (!%p406_p10)
}
  0x1a   :  { %s410_s16 = scalar_lea.vmem %s512_s21, 128  ;;  %p415_p12 = scmp.lt.s32.totalorder %s512_s21, %s512_s21 }
  0x1b   :  { %p411_p11 = scmp.ne.s32.totalorder %s512_s21, %s410_s16  ;;  %p416_p13 = scmp.lt.s32.totalorder %s410_s16, %s410_s16 }
  0x1d   :  { %p417_p0 = por %p416_p13, %p415_p12 }
  0x1f   :  { %p418_p1 = pnand %p417_p0, %p411_p11 }
  0x21   :  { %421 = shalt.err (!%p418_p1)
}
  0x22   :  { %24 = dma.hbm_to_vmem [thread:$0]  %s582_s0, 128, %s512_s21, [#allocation3], %s474_s30, %s474_s30, %s475_s6  }
  0x23   :  { %s476_s18 = smov [#allocation7]   ;;  %s422_s23 = scalar_lea.hbm %s585_s3, 1024 }
  0x24   :  { %s44_s19 = sshll.u32 %s476_s18, 4  ;;  %p423_p2 = scmp.ne.s32.totalorder %s585_s3, %s422_s23  ;;  %s45_s19 = int_to_ptr.vmem [resolvable:$true] %s44_s19 }
  0x25   :  { %p426_p3 = scmp.lt.u32.totalorder %s422_s23, %s585_s3 }
  0x27   :  { %p428_p4 = pnand %p426_p3, %p423_p2 }
  0x29   :  { %431 = shalt.err (!%p428_p4)
}
  0x2a   :  { %s432_s28 = scalar_lea.vmem %s45_s19, 1024  ;;  %p437_p6 = scmp.lt.s32.totalorder %s45_s19, %s45_s19 }
  0x2b   :  { %p433_p5 = scmp.ne.s32.totalorder %s45_s19, %s432_s28  ;;  %p438_p7 = scmp.lt.s32.totalorder %s432_s28, %s432_s28 }
  0x2d   :  { %p439_p8 = por %p438_p7, %p437_p6 }
  0x2f   :  { %p440_p9 = pnand %p439_p8, %p433_p5 }
  0x31   :  { %443 = shalt.err (!%p440_p9)
}
  0x32   :  { %50 = dma.hbm_to_vmem [thread:$0]  %s585_s3, 1024, %s45_s19, [#allocation6], %s474_s30, %s474_s30, %s475_s6  }
  0x33   :  { %466 = dma.done.wait [#allocation3], 128  }
  0x34   :  { %467 = vsyncadd [#allocation3], 4294967168 }
  0x35   :  { %468 = dma.done.wait [#allocation6], 1536  }
  0x36   :  { %469 = vsyncadd [#allocation6], 4294965760  ;;  %v477_v0 = vmov 0.0   ;;  %vm478_vm0 = vmmov 0   ;;  %v365_v1 = vld [vmem:[#allocation5] sm:$0xff]   ;;  %v366_v2 = vld [vmem:[#allocation5 + $0x8] sm:$0xff]  }
  0x37   :  { %323 = vmatprep.subr.bf16.mxu0 %v477_v0  ;;  %331 = vmatprep.mubr.msk.bf16.mxu0 %vm478_vm0, %v477_v0  ;;  %v370_v3 = vld [vmem:[#allocation7] sm:$0xff]   ;;  %v367_v4 = vld [vmem:[#allocation5 + $0x10] sm:$0xff]   ;;  %v371_v5 = vld [vmem:[#allocation7 + $0x8] sm:$0xff]   ;;  %vm109_vm1 = vcmask 523264   ;;  %s479_s7 = smov [#allocation8]  }
  0x38   :  { %335 = vmatprep.subr.bf16.mxu1 %v477_v0  ;;  %351 = vmatprep.mubr.msk.bf16.mxu1 %vm478_vm0, %v477_v0  ;;  %v368_v6 = vld [vmem:[#allocation5 + $0x18] sm:$0xff]   ;;  %v372_v7 = vld [vmem:[#allocation7 + $0x10] sm:$0xff]   ;;  %v374_v10 = vld [vmem:[#allocation7 + $0x20] sm:$0xff]  }
  0x39   :  { %324 = vmatpush3.bf16.msra.mxu0 %v365_v1  ;;  %336 = vmatpush3.bf16.msra.mxu1 %v370_v3  ;;  %v369_v8 = vld [vmem:[#allocation2] sm:$0xff]   ;;  %v375_v11 = vld [vmem:[#allocation7 + $0x28] sm:$0xff]   ;;  %v376_v12 = vld [vmem:[#allocation7 + $0x30] sm:$0xff]  }
  0x3a   :  { %325 = vmatprep.subr.bf16.mxu0 %v477_v0  ;;  %337 = vmatprep.subr.bf16.mxu1 %v477_v0  ;;  %v373_v9 = vld [vmem:[#allocation7 + $0x18] sm:$0xff]  }
  0x3b   :  { %v377_v13 = vld [vmem:[#allocation7 + $0x38] sm:$0xff]  }
  0x3c   :  { %v293_v14 = vld [vmem:[%s584_s2] ss:$0 sm:$0xff]  ;;  %s280_s2 = sshll.u32 %s479_s7, 4  ;;  %s281_s2 = int_to_ptr.vmem [resolvable:$true] %s280_s2 }
  0x3d   :  { %326 = vmatpush3.bf16.msra.mxu0 %v366_v2  ;;  %338 = vmatpush3.bf16.msra.mxu1 %v371_v5  ;;  %v300_v26 = vld [vmem:[%s586_s4] ss:$0 sm:$0xff]  ;;  %s444_s8 = scalar_lea.vmem %s281_s2, 256  ;;  %p449_p11 = scmp.lt.s32.totalorder %s281_s2, %s281_s2 }
  0x3e   :  { %327 = vmatprep.subr.bf16.mxu0 %v477_v0  ;;  %339 = vmatprep.subr.bf16.mxu1 %v477_v0  ;;  %p445_p10 = scmp.ne.s32.totalorder %s281_s2, %s444_s8  ;;  %p450_p12 = scmp.lt.s32.totalorder %s444_s8, %s444_s8 }
  0x40   :  { %p451_p13 = por %p450_p12, %p449_p11 }
  0x41   :  { %328 = vmatpush3.bf16.msra.mxu0 %v367_v4  ;;  %340 = vmatpush3.bf16.msra.mxu1 %v372_v7 }
  0x42   :  { %329 = vmatprep.subr.bf16.mxu0 %v477_v0  ;;  %341 = vmatprep.subr.bf16.mxu1 %v477_v0  ;;  %p452_p0 = pnand %p451_p13, %p445_p10 }
  0x45   :  { %330 = vmatpush3.bf16.msra.mxu0 %v368_v6  ;;  %342 = vmatpush3.bf16.msra.mxu1 %v373_v9 }
  0x46   :  { %343 = vmatprep.subr.bf16.mxu1 %v477_v0 }
  0x48   :  { %332 = vmatmul.mubr.msk.bf16.vlgmr.msra.gmra.mrb[0].mxu0 %vm109_vm1, %v369_v8 }
  0x49   :  { %344 = vmatpush3.bf16.msra.mxu1 %v374_v10 }
  0x4a   :  { %345 = vmatprep.subr.bf16.mxu1 %v477_v0 }
  0x4d   :  { %346 = vmatpush3.bf16.msra.mxu1 %v375_v11 }
  0x4e   :  { %347 = vmatprep.subr.bf16.mxu1 %v477_v0 }
  0x51   :  { %348 = vmatpush3.bf16.msra.mxu1 %v376_v12 }
  0x52   :  { %349 = vmatprep.subr.bf16.mxu1 %v477_v0 }
  0x55   :  { %350 = vmatpush3.bf16.msra.mxu1 %v377_v13 }
 0x11b   :  { %v147_v15 = vpop.f32.mrb[0].mxu0 }
 0x11c   :  { %v148_v16 = vadd.f32 %v293_v14, %v147_v15  ;;  %v333_v17 = vpop.f32.mrb[1].mxu0 }
 0x11d   :  { %v150_v18 = vpop.f32.mrb[2].mxu0 }
 0x11e   :  { %v156_v19 = vmul.f32 0.1, %v148_v16  ;;  %v151_v20 = vadd.f32 %v293_v14, %v150_v18  ;;  %v334_v21 = vpop.f32.mrb[3].mxu0  ;;  %vm154_vm2 = vcmp.gt.f32.partialorder %v148_v16, 0.0 }
 0x120   :  { %vm155_vm3 = vcmp.gt.f32.partialorder %v151_v20, 0.0  ;;  %v157_v22 = vmul.f32 0.1, %v151_v20  ;;  %v158_v23 = vsel %vm154_vm2, %v148_v16, %v156_v19 }
 0x122   :  { %v159_v24 = vsel %vm155_vm3, %v151_v20, %v157_v22 }
 0x123   :  { %v160_v25 = vpack.c.bf16 %v159_v24, %v158_v23 }
 0x125   :  { %352 = vmatmul.mubr.bf16.vlgmr.msra.gmra.mrb[0].mxu1 %v160_v25 }
 0x1f8   :  { %v266_v27 = vpop.f32.mrb[0].mxu1 }
 0x1f9   :  { %v267_v28 = vadd.f32 %v300_v26, %v266_v27  ;;  %v353_v29 = vpop.f32.mrb[1].mxu1 }
 0x1fa   :  { %v269_v30 = vpop.f32.mrb[2].mxu1 }
 0x1fb   :  { %273 = vst [vmem:[#allocation8] sm:$0xff] %v267_v28  ;;  %v270_v31 = vadd.f32 %v300_v26, %v269_v30  ;;  %v354_v32 = vpop.f32.mrb[3].mxu1 }
 0x1fd   :  { %274 = vst [vmem:[#allocation8 + $0x8] sm:$0xff] %v270_v31 }
 0x1fe   :  { %455 = shalt.err (!%p452_p0)
}
 0x1ff   :  { %s456_s10 = scalar_lea.hbm %s587_s5, 256 }
 0x200   :  { %p457_p1 = scmp.ne.s32.totalorder %s587_s5, %s456_s10  ;;  %p460_p2 = scmp.lt.u32.totalorder %s456_s10, %s587_s5 }
 0x202   :  { %p462_p3 = pnand %p460_p2, %p457_p1 }
 0x204   :  { %465 = shalt.err (!%p462_p3)
}
 0x205   :  { %s480_s15 = smov 128   ;;  %s481_s16 = smov 8  }
 0x206   :  { %286 = dma.vmem_to_hbm [thread:$0]  %s281_s2, 256, %s587_s5, [#allocation4], %s480_s15, %s480_s15, %s481_s16  }
 0x207   :  { %470 = dma.done.wait [#allocation4], 256  }
 0x208   :  { %471 = vsyncadd [#allocation4], 4294967040 }
 0x209   :  { %290 = vsyncpa [#allocation3], 1 }
 0x20a   :  { %291 = vsyncpa [#allocation6], 1 }
 0x20b   :  { %292 = vsyncpa [#allocation4], 1 }

// kernel: tpu_custom_call.1
= control target key start
LH: loop header
LB: loop body
LE: loop exit
PB: predicated region body
PF: predicated region fallthrough
CT: control target
= control target key end

     0   :  { %10 = vsyncpa [#allocation3], 0  ;;  %s582_s0 = inlined_call_operand.hbm [shape: bf16[16,64], index: 0, kind: input, shape index: {}]   ;;  %s583_s1 = inlined_call_operand.hbm [shape: bf16[64,128], index: 1, kind: input, shape index: {}]   ;;  %s584_s2 = inlined_call_operand.vmem [shape: f32[1,128], index: 2, kind: input, shape index: {}]   ;;  %s585_s3 = inlined_call_operand.hbm [shape: bf16[128,128], index: 3, kind: input, shape index: {}]   ;;  %s586_s4 = inlined_call_operand.vmem [shape: f32[1,128], index: 4, kind: input, shape index: {}]   ;;  %s587_s5 = inlined_call_operand.hbm [shape: f32[16,128], index: 5, kind: output, shape index: {}]  }
   0x1   :  { %11 = vsyncpa [#allocation6], 0 }
   0x2   :  { %12 = vsyncpa [#allocation4], 0  ;;  %s472_s18 = smov [#allocation5]   ;;  %s473_s20 = smov [#allocation2]  }
   0x3   :  { %s30_s19 = sshll.u32 %s472_s18, 4  ;;  %s18_s21 = sshll.u32 %s473_s20, 4  ;;  %s31_s19 = int_to_ptr.vmem [resolvable:$true] %s30_s19  ;;  %s512_s21 = int_to_ptr.vmem [resolvable:$true] %s18_s21 }
   0x4   :  { %s378_s24 = scalar_lea.hbm %s583_s1, 512 }
   0x5   :  { %p379_p0 = scmp.ne.s32.totalorder %s583_s1, %s378_s24  ;;  %p382_p1 = scmp.lt.u32.totalorder %s378_s24, %s583_s1 }
   0x7   :  { %p384_p2 = pnand %p382_p1, %p379_p0 }
   0x9   :  { %387 = shalt.err (!%p384_p2)
}
   0xa   :  { %s388_s29 = scalar_lea.vmem %s31_s19, 512  ;;  %p393_p4 = scmp.lt.s32.totalorder %s31_s19, %s31_s19 }
   0xb   :  { %p389_p3 = scmp.ne.s32.totalorder %s31_s19, %s388_s29  ;;  %p394_p5 = scmp.lt.s32.totalorder %s388_s29, %s388_s29 }
   0xd   :  { %p395_p6 = por %p394_p5, %p393_p4 }
   0xf   :  { %p396_p7 = pnand %p395_p6, %p389_p3 }
  0x11   :  { %399 = shalt.err (!%p396_p7)
}
  0x12   :  { %s474_s30 = smov 64   ;;  %s475_s6 = smov 4  }
  0x13   :  { %36 = dma.hbm_to_vmem [thread:$0]  %s583_s1, 512, %s31_s19, [#allocation6], %s474_s30, %s474_s30, %s475_s6  }
  0x14   :  { %s400_s11 = scalar_lea.hbm %s582_s0, 128 }
  0x15   :  { %p401_p8 = scmp.ne.s32.totalorder %s582_s0, %s400_s11  ;;  %p404_p9 = scmp.lt.u32.totalorder %s400_s11, %s582_s0 }
  0x17   :  { %p406_p10 = pnand %p404_p9, %p401_p8 }
  0x19   :  { %409 = shalt.err (!%p406_p10)
}
  0x1a   :  { %s410_s16 = scalar_lea.vmem %s512_s21, 128  ;;  %p415_p12 = scmp.lt.s32.totalorder %s512_s21, %s512_s21 }
  0x1b   :  { %p411_p11 = scmp.ne.s32.totalorder %s512_s21, %s410_s16  ;;  %p416_p13 = scmp.lt.s32.totalorder %s410_s16, %s410_s16 }
  0x1d   :  { %p417_p0 = por %p416_p13, %p415_p12 }
  0x1f   :  { %p418_p1 = pnand %p417_p0, %p411_p11 }
  0x21   :  { %421 = shalt.err (!%p418_p1)
}
  0x22   :  { %24 = dma.hbm_to_vmem [thread:$0]  %s582_s0, 128, %s512_s21, [#allocation3], %s474_s30, %s474_s30, %s475_s6  }
  0x23   :  { %s476_s18 = smov [#allocation7]   ;;  %s422_s23 = scalar_lea.hbm %s585_s3, 1024 }
  0x24   :  { %s44_s19 = sshll.u32 %s476_s18, 4  ;;  %p423_p2 = scmp.ne.s32.totalorder %s585_s3, %s422_s23  ;;  %s45_s19 = int_to_ptr.vmem [resolvable:$true] %s44_s19 }
  0x25   :  { %p426_p3 = scmp.lt.u32.totalorder %s422_s23, %s585_s3 }
  0x27   :  { %p428_p4 = pnand %p426_p3, %p423_p2 }
  0x29   :  { %431 = shalt.err (!%p428_p4)
}
  0x2a   :  { %s432_s28 = scalar_lea.vmem %s45_s19, 1024  ;;  %p437_p6 = scmp.lt.s32.totalorder %s45_s19, %s45_s19 }
  0x2b   :  { %p433_p5 = scmp.ne.s32.totalorder %s45_s19, %s432_s28  ;;  %p438_p7 = scmp.lt.s32.totalorder %s432_s28, %s432_s28 }
  0x2d   :  { %p439_p8 = por %p438_p7, %p437_p6 }
  0x2f   :  { %p440_p9 = pnand %p439_p8, %p433_p5 }
  0x31   :  { %443 = shalt.err (!%p440_p9)
}
  0x32   :  { %50 = dma.hbm_to_vmem [thread:$0]  %s585_s3, 1024, %s45_s19, [#allocation6], %s474_s30, %s474_s30, %s475_s6  }
  0x33   :  { %466 = dma.done.wait [#allocation3], 128  }
  0x34   :  { %467 = vsyncadd [#allocation3], 4294967168 }
  0x35   :  { %468 = dma.done.wait [#allocation6], 1536  }
  0x36   :  { %469 = vsyncadd [#allocation6], 4294965760  ;;  %v477_v0 = vmov 0.0   ;;  %vm478_vm0 = vmmov 0   ;;  %v365_v1 = vld [vmem:[#allocation5] sm:$0xff]   ;;  %v366_v2 = vld [vmem:[#allocation5 + $0x8] sm:$0xff]  }
  0x37   :  { %323 = vmatprep.subr.bf16.mxu0 %v477_v0  ;;  %331 = vmatprep.mubr.msk.bf16.mxu0 %vm478_vm0, %v477_v0  ;;  %v370_v3 = vld [vmem:[#allocation7] sm:$0xff]   ;;  %v367_v4 = vld [vmem:[#allocation5 + $0x10] sm:$0xff]   ;;  %v371_v5 = vld [vmem:[#allocation7 + $0x8] sm:$0xff]   ;;  %vm109_vm1 = vcmask 523264   ;;  %s479_s7 = smov [#allocation8]  }
  0x38   :  { %335 = vmatprep.subr.bf16.mxu1 %v477_v0  ;;  %351 = vmatprep.mubr.msk.bf16.mxu1 %vm478_vm0, %v477_v0  ;;  %v368_v6 = vld [vmem:[#allocation5 + $0x18] sm:$0xff]   ;;  %v372_v7 = vld [vmem:[#allocation7 + $0x10] sm:$0xff]   ;;  %v374_v10 = vld [vmem:[#allocation7 + $0x20] sm:$0xff]  }
  0x39   :  { %324 = vmatpush3.bf16.msra.mxu0 %v365_v1  ;;  %336 = vmatpush3.bf16.msra.mxu1 %v370_v3  ;;  %v369_v8 = vld [vmem:[#allocation2] sm:$0xff]   ;;  %v375_v11 = vld [vmem:[#allocation7 + $0x28] sm:$0xff]   ;;  %v376_v12 = vld [vmem:[#allocation7 + $0x30] sm:$0xff]  }
  0x3a   :  { %325 = vmatprep.subr.bf16.mxu0 %v477_v0  ;;  %337 = vmatprep.subr.bf16.mxu1 %v477_v0  ;;  %v373_v9 = vld [vmem:[#allocation7 + $0x18] sm:$0xff]  }
  0x3b   :  { %v377_v13 = vld [vmem:[#allocation7 + $0x38] sm:$0xff]  }
  0x3c   :  { %v293_v14 = vld [vmem:[%s584_s2] ss:$0 sm:$0xff]  ;;  %s280_s2 = sshll.u32 %s479_s7, 4  ;;  %s281_s2 = int_to_ptr.vmem [resolvable:$true] %s280_s2 }
  0x3d   :  { %326 = vmatpush3.bf16.msra.mxu0 %v366_v2  ;;  %338 = vmatpush3.bf16.msra.mxu1 %v371_v5  ;;  %v300_v26 = vld [vmem:[%s586_s4] ss:$0 sm:$0xff]  ;;  %s444_s8 = scalar_lea.vmem %s281_s2, 256  ;;  %p449_p11 = scmp.lt.s32.totalorder %s281_s2, %s281_s2 }
  0x3e   :  { %327 = vmatprep.subr.bf16.mxu0 %v477_v0  ;;  %339 = vmatprep.subr.bf16.mxu1 %v477_v0  ;;  %p445_p10 = scmp.ne.s32.totalorder %s281_s2, %s444_s8  ;;  %p450_p12 = scmp.lt.s32.totalorder %s444_s8, %s444_s8 }
  0x40   :  { %p451_p13 = por %p450_p12, %p449_p11 }
  0x41   :  { %328 = vmatpush3.bf16.msra.mxu0 %v367_v4  ;;  %340 = vmatpush3.bf16.msra.mxu1 %v372_v7 }
  0x42   :  { %329 = vmatprep.subr.bf16.mxu0 %v477_v0  ;;  %341 = vmatprep.subr.bf16.mxu1 %v477_v0  ;;  %p452_p0 = pnand %p451_p13, %p445_p10 }
  0x45   :  { %330 = vmatpush3.bf16.msra.mxu0 %v368_v6  ;;  %342 = vmatpush3.bf16.msra.mxu1 %v373_v9 }
  0x46   :  { %343 = vmatprep.subr.bf16.mxu1 %v477_v0 }
  0x48   :  { %332 = vmatmul.mubr.msk.bf16.vlgmr.msra.gmra.mrb[0].mxu0 %vm109_vm1, %v369_v8 }
  0x49   :  { %344 = vmatpush3.bf16.msra.mxu1 %v374_v10 }
  0x4a   :  { %345 = vmatprep.subr.bf16.mxu1 %v477_v0 }
  0x4d   :  { %346 = vmatpush3.bf16.msra.mxu1 %v375_v11 }
  0x4e   :  { %347 = vmatprep.subr.bf16.mxu1 %v477_v0 }
  0x51   :  { %348 = vmatpush3.bf16.msra.mxu1 %v376_v12 }
  0x52   :  { %349 = vmatprep.subr.bf16.mxu1 %v477_v0 }
  0x55   :  { %350 = vmatpush3.bf16.msra.mxu1 %v377_v13 }
 0x11b   :  { %v147_v15 = vpop.f32.mrb[0].mxu0 }
 0x11c   :  { %v148_v16 = vadd.f32 %v293_v14, %v147_v15  ;;  %v333_v17 = vpop.f32.mrb[1].mxu0 }
 0x11d   :  { %v150_v18 = vpop.f32.mrb[2].mxu0 }
 0x11e   :  { %v156_v19 = vmul.f32 0.1, %v148_v16  ;;  %v151_v20 = vadd.f32 %v293_v14, %v150_v18  ;;  %v334_v21 = vpop.f32.mrb[3].mxu0  ;;  %vm154_vm2 = vcmp.gt.f32.partialorder %v148_v16, 0.0 }
 0x120   :  { %vm155_vm3 = vcmp.gt.f32.partialorder %v151_v20, 0.0  ;;  %v157_v22 = vmul.f32 0.1, %v151_v20  ;;  %v158_v23 = vsel %vm154_vm2, %v148_v16, %v156_v19 }
 0x122   :  { %v159_v24 = vsel %vm155_vm3, %v151_v20, %v157_v22 }
 0x123   :  { %v160_v25 = vpack.c.bf16 %v159_v24, %v158_v23 }
 0x125   :  { %352 = vmatmul.mubr.bf16.vlgmr.msra.gmra.mrb[0].mxu1 %v160_v25 }
 0x1f8   :  { %v266_v27 = vpop.f32.mrb[0].mxu1 }
 0x1f9   :  { %v267_v28 = vadd.f32 %v300_v26, %v266_v27  ;;  %v353_v29 = vpop.f32.mrb[1].mxu1 }
 0x1fa   :  { %v269_v30 = vpop.f32.mrb[2].mxu1 }
 0x1fb   :  { %273 = vst [vmem:[#allocation8] sm:$0xff] %v267_v28  ;;  %v270_v31 = vadd.f32 %v300_v26, %v269_v30  ;;  %v354_v32 = vpop.f32.mrb[3].mxu1 }
 0x1fd   :  { %274 = vst [vmem:[#allocation8 + $0x8] sm:$0xff] %v270_v31 }
 0x1fe   :  { %455 = shalt.err (!%p452_p0)
}
 0x1ff   :  { %s456_s10 = scalar_lea.hbm %s587_s5, 256 }
 0x200   :  { %p457_p1 = scmp.ne.s32.totalorder %s587_s5, %s456_s10  ;;  %p460_p2 = scmp.lt.u32.totalorder %s456_s10, %s587_s5 }
 0x202   :  { %p462_p3 = pnand %p460_p2, %p457_p1 }
 0x204   :  { %465 = shalt.err (!%p462_p3)
}
 0x205   :  { %s480_s15 = smov 128   ;;  %s481_s16 = smov 8  }
 0x206   :  { %286 = dma.vmem_to_hbm [thread:$0]  %s281_s2, 256, %s587_s5, [#allocation4], %s480_s15, %s480_s15, %s481_s16  }
 0x207   :  { %470 = dma.done.wait [#allocation4], 256  }
 0x208   :  { %471 = vsyncadd [#allocation4], 4294967040 }
 0x209   :  { %290 = vsyncpa [#allocation3], 1 }
 0x20a   :  { %291 = vsyncpa [#allocation6], 1 }
 0x20b   :  { %292 = vsyncpa [#allocation4], 1 }

</bundles_post_ra>
